<compile_context>
chip_gen: v5e
topology: v5e:2x2
jax: 0.10.0
libtpu: 0.0.40
codegen_flags: <defaults>
</compile_context>

<pallas_src>
import functools
import math

import jax
import jax.numpy as jnp
import numpy as np
from jax import lax
from jax.experimental import pallas as pl
from jax.experimental.pallas import tpu as pltpu


# --------------------------- fused QKV projection ---------------------------

def _qkv_proj_kernel(q_ref, k_ref, v_ref, wq_ref, wk_ref, wv_ref,
                     bq_ref, bk_ref, bv_ref, qo_ref, ko_ref, vo_ref):
    # x: (TL, D)  w: (D, Dh)  b: (1, Dh)  out: (TL, Dh)
    def proj(x_ref, w_ref, b_ref, o_ref):
        y = jnp.dot(x_ref[...], w_ref[...], preferred_element_type=jnp.float32)
        o_ref[...] = (y + b_ref[...]).astype(o_ref.dtype)

    proj(q_ref, wq_ref, bq_ref, qo_ref)
    proj(k_ref, wk_ref, bk_ref, ko_ref)
    proj(v_ref, wv_ref, bv_ref, vo_ref)


def qkv_project(q, k, v, wq_h, wk_h, wv_h, bq_h, bk_h, bv_h, *, block_l=256):
    """q,k,v: [B, L, D]; w*_h: [H, D, Dh]; b*_h: [H, 1, Dh] -> three [B, H, L, Dh]."""
    B, L, D = q.shape
    H, _, Dh = wk_h.shape
    TL = min(block_l, L)
    assert L % TL == 0

    x_spec = pl.BlockSpec((None, TL, D), lambda b, l, h: (b, l, 0))
    w_spec = pl.BlockSpec((None, D, Dh), lambda b, l, h: (h, 0, 0))
    b_spec = pl.BlockSpec((None, 1, Dh), lambda b, l, h: (h, 0, 0))
    o_spec = pl.BlockSpec((None, None, TL, Dh), lambda b, l, h: (b, h, l, 0))
    o_shape = jax.ShapeDtypeStruct((B, H, L, Dh), jnp.float32)

    return pl.pallas_call(
        _qkv_proj_kernel,
        grid=(B, L // TL, H),                  # h innermost: x block stays resident across heads
        in_specs=[x_spec, x_spec, x_spec, w_spec, w_spec, w_spec,
                  b_spec, b_spec, b_spec],
        out_specs=(o_spec, o_spec, o_spec),
        out_shape=(o_shape, o_shape, o_shape),
        compiler_params=pltpu.CompilerParams(
            dimension_semantics=("parallel", "parallel", "parallel")),
    )(q, k, v, wq_h, wk_h, wv_h, bq_h, bk_h, bv_h)


# ------------------------- CL4KT monotonic attention ------------------------

def _prefix_sum_lanes(x, length):
    """Inclusive prefix sum along the last axis via log-step shifted adds (VPU only)."""
    shift = 1
    while shift < length:
        zeros = jnp.zeros(x.shape[:-1] + (shift,), x.dtype)
        x = x + jnp.concatenate([zeros, x[..., :length - shift]], axis=-1)
        shift *= 2
    return x


def _cl4kt_attn_kernel(gamma_ref, mask_ref, q_ref, k_ref, v_ref, out_ref, attn_ref,
                       *, d_k, seq_len, block_q, zero_pad):
    h = pl.program_id(1)
    qt = pl.program_id(2)

    q = q_ref[...]                               # (TQ, Dh) f32
    k = k_ref[...]                               # (L,  Dh) f32
    v = v_ref[...]                               # (L,  Dh) f32
    keep = mask_ref[...] != 0                    # (TQ, L)  bool
    keep_f = keep.astype(jnp.float32)

    # scores = (Q @ K^T) / sqrt(d_k) -- bf16 MXU operands, f32 accumulation.
    scores = lax.dot_general(
        q.astype(jnp.bfloat16), k.astype(jnp.bfloat16),
        (((1,), (1,)), ((), ())), preferred_element_type=jnp.float32)
    scores = scores * (1.0 / math.sqrt(d_k))

    neg_inf = jnp.float32(-1e32)

    # Masked softmax used only for the distance statistics (torch.no_grad block).
    s_ = jnp.where(keep, scores, neg_inf)
    m_ = jnp.max(s_, axis=-1, keepdims=True)
    e_ = jnp.exp(s_ - m_)
    p_ = e_ / jnp.sum(e_, axis=-1, keepdims=True)
    p_ = p_ * keep_f

    # disttotal - distcum == reverse-exclusive cumsum of p_ along the key axis.
    distcum = _prefix_sum_lanes(p_, seq_len)
    disttotal = jnp.sum(p_, axis=-1, keepdims=True)
    dist_rem = disttotal - distcum

    row_ids = lax.broadcasted_iota(jnp.int32, (block_q, seq_len), 0) + qt * block_q
    col_ids = lax.broadcasted_iota(jnp.int32, (block_q, seq_len), 1)
    position_effect = jnp.abs(col_ids - row_ids).astype(jnp.float32)
    dist_scores = jnp.sqrt(jnp.maximum(dist_rem * position_effect, 0.0))

    gamma = gamma_ref[h]                         # scalar: -softplus(gamma_h), from SMEM
    total_effect = jnp.clip(jnp.exp(dist_scores * gamma), 1e-5, 1e5)

    scores = jnp.where(keep, scores * total_effect, neg_inf)
    m2 = jnp.max(scores, axis=-1, keepdims=True)
    e2 = jnp.exp(scores - m2)
    attn = e2 / jnp.sum(e2, axis=-1, keepdims=True)

    if zero_pad:
        attn = jnp.where(row_ids == 0, 0.0, attn)   # zero the first (global) query row

    attn_ref[...] = attn.astype(attn_ref.dtype)
    # TODO(synk): attention dropout omitted (eval-mode / identity semantics).
    out = lax.dot_general(
        attn.astype(jnp.bfloat16), v.astype(jnp.bfloat16),
        (((1,), (0,)), ((), ())), preferred_element_type=jnp.float32)
    out_ref[...] = out.astype(out_ref.dtype)


def cl4kt_attention(q, k, v, mask, gamma_neg, *, zero_pad=True, block_q=128,
                    attn_dtype=jnp.float32):
    """q,k,v: [B, H, L, Dh]; mask: [L, L] (nonzero = attend); gamma_neg: [H] = -softplus."""
    B, H, L, Dh = q.shape
    TQ = min(block_q, L)
    assert L % TQ == 0
    mask_i = (mask != 0).astype(jnp.int32)       # TODO(synk): int8/bool or in-kernel causal iota would shrink this further
    kernel = functools.partial(_cl4kt_attn_kernel, d_k=Dh, seq_len=L,
                               block_q=TQ, zero_pad=zero_pad)
    out, attn = pl.pallas_call(
        kernel,
        grid=(B, H, L // TQ),
        out_shape=(jax.ShapeDtypeStruct((B, H, L, Dh), jnp.float32),
                   jax.ShapeDtypeStruct((B, H, L, L), attn_dtype)),
        in_specs=[
            pl.BlockSpec(memory_space=pltpu.MemorySpace.SMEM),                   # gamma_neg
            pl.BlockSpec((TQ, L), lambda b, h, t: (t, 0)),                       # mask
            pl.BlockSpec((None, None, TQ, Dh), lambda b, h, t: (b, h, t, 0)),    # q
            pl.BlockSpec((None, None, L, Dh), lambda b, h, t: (b, h, 0, 0)),     # k (resident)
            pl.BlockSpec((None, None, L, Dh), lambda b, h, t: (b, h, 0, 0)),     # v (resident)
        ],
        out_specs=(
            pl.BlockSpec((None, None, TQ, Dh), lambda b, h, t: (b, h, t, 0)),
            pl.BlockSpec((None, None, TQ, L), lambda b, h, t: (b, h, t, 0)),
        ),
        compiler_params=pltpu.CompilerParams(
            dimension_semantics=("parallel", "parallel", "parallel"),
            vmem_limit_bytes=48 * 1024 * 1024),
    )(gamma_neg, mask_i, q, k, v)
    return out, attn


# -------------------- output projection (reduction over heads) ---------------

def _out_proj_kernel(x_ref, w_ref, b_ref, o_ref):
    @pl.when(pl.program_id(2) == 0)
    def _():
        o_ref[...] = jnp.broadcast_to(b_ref[...], o_ref.shape).astype(o_ref.dtype)
    o_ref[...] += jnp.dot(x_ref[...], w_ref[...],
                          preferred_element_type=jnp.float32).astype(o_ref.dtype)


def out_project(x_heads, wo_h, b_o2d, *, block_l=256):
    """x_heads: [B, H, L, Dh]; wo_h: [H, Dh, D]; b_o2d: [1, D] -> [B, L, D]."""
    B, H, L, Dh = x_heads.shape
    D = wo_h.shape[-1]
    TL = min(block_l, L)
    assert L % TL == 0
    return pl.pallas_call(
        _out_proj_kernel,
        grid=(B, L // TL, H),                    # heads (reduction) innermost
        in_specs=[
            pl.BlockSpec((None, None, TL, Dh), lambda b, l, h: (b, h, l, 0)),
            pl.BlockSpec((None, Dh, D), lambda b, l, h: (h, 0, 0)),
            pl.BlockSpec((1, D), lambda b, l, h: (0, 0)),
        ],
        out_specs=pl.BlockSpec((None, TL, D), lambda b, l, h: (b, l, 0)),
        out_shape=jax.ShapeDtypeStruct((B, L, D), jnp.float32),
        compiler_params=pltpu.CompilerParams(
            dimension_semantics=("parallel", "parallel", "arbitrary")),
    )(x_heads, wo_h, b_o2d)


# ------------------------------ Module wrapper -------------------------------

def _xavier_uniform(key, shape, fan_in, fan_out):
    bound = math.sqrt(6.0 / (fan_in + fan_out))
    return jax.random.uniform(key, shape, jnp.float32, -bound, bound)


class MultiHeadAttentionWithIndividualFeatures:
    def __init__(self, dim_model, num_head, key_query_same=True, seed=0):
        self.dim_model = dim_model
        self.num_head = num_head
        self.key_query_same = key_query_same
        D, H = dim_model, num_head
        Dh = D // H
        self.dim_head = Dh
        keys = jax.random.split(jax.random.PRNGKey(seed), 5)

        self.w_k = _xavier_uniform(keys[0], (D, D), D, D)
        self.b_k = jnp.zeros((D,), jnp.float32)
        self.w_v = _xavier_uniform(keys[1], (D, D), D, D)
        self.b_v = jnp.zeros((D,), jnp.float32)
        if not key_query_same:
            self.w_q = _xavier_uniform(keys[2], (D, D), D, D)
            self.b_q = jnp.zeros((D,), jnp.float32)
        self.w_o = _xavier_uniform(keys[3], (D, D), D, D)
        self.b_o = jnp.zeros((D,), jnp.float32)
        # torch: Parameter(zeros(num_head,1,1)) then xavier_uniform_ (fan_in=1, fan_out=H)
        self.gammas = _xavier_uniform(keys[4], (H, 1, 1), 1, H)

        # --- kernel-ready layouts, prepared once at init (no per-call w.T) ---
        def per_head_in(w):     # columns of W^T, split per head: (H, D, Dh)
            return jnp.transpose(w.T.reshape(D, H, Dh), (1, 0, 2))

        self.wk_h = per_head_in(self.w_k)
        self.bk_h = self.b_k.reshape(H, 1, Dh)
        self.wv_h = per_head_in(self.w_v)
        self.bv_h = self.b_v.reshape(H, 1, Dh)
        if key_query_same:
            self.wq_h, self.bq_h = self.wk_h, self.bk_h
        else:
            self.wq_h = per_head_in(self.w_q)
            self.bq_h = self.b_q.reshape(H, 1, Dh)
        self.wo_h = self.w_o.T.reshape(H, Dh, D)   # rows of W_o^T, split per head
        self.bo_2d = self.b_o.reshape(1, D)

    def __call__(self, q, k, v, mask, zero_pad=True):
        H = self.num_head
        qh, kh, vh = qkv_project(q, k, v, self.wq_h, self.wk_h, self.wv_h,
                                 self.bq_h, self.bk_h, self.bv_h)
        gamma_neg = (-jax.nn.softplus(self.gammas)).reshape(H).astype(jnp.float32)
        out_h, attn = cl4kt_attention(qh, kh, vh, mask, gamma_neg, zero_pad=zero_pad)
        output = out_project(out_h, self.wo_h, self.bo_2d)
        return output, attn


# ----------------------------- pure-JAX reference ----------------------------

def reference_forward(mod, q, k, v, mask, zero_pad=True, mxu_bf16=False):
    B, L, D = q.shape
    H, Dh = mod.num_head, D // mod.num_head
    hp = lax.Precision.HIGHEST

    def lin(x, w, b):
        return jnp.matmul(x, w.T, precision=hp) + b

    def att_mm(a, b):
        if mxu_bf16:   # mirror the kernel's bf16 MXU operands (f32 accumulation)
            return jnp.matmul(a.astype(jnp.bfloat16), b.astype(jnp.bfloat16),
                              preferred_element_type=jnp.float32)
        return jnp.matmul(a, b, precision=hp)

    k_p = lin(k, mod.w_k, mod.b_k).reshape(B, L, H, Dh).transpose(0, 2, 1, 3)
    if mod.key_query_same:
        q_p = lin(q, mod.w_k, mod.b_k).reshape(B, L, H, Dh).transpose(0, 2, 1, 3)
    else:
        q_p = lin(q, mod.w_q, mod.b_q).reshape(B, L, H, Dh).transpose(0, 2, 1, 3)
    v_p = lin(v, mod.w_v, mod.b_v).reshape(B, L, H, Dh).transpose(0, 2, 1, 3)

    scores = att_mm(q_p, jnp.swapaxes(k_p, -1, -2)) / math.sqrt(Dh)
    maskf = (mask != 0).astype(jnp.float32)
    keep = maskf != 0
    s_ = jnp.where(keep, scores, -1e32)
    p_ = jax.nn.softmax(s_, axis=-1) * maskf
    distcum = jnp.cumsum(p_, axis=-1)
    disttotal = jnp.sum(p_, axis=-1, keepdims=True)
    x1 = jnp.arange(L)[None, :]
    x2 = jnp.arange(L)[:, None]
    position_effect = jnp.abs(x1 - x2).astype(jnp.float32)[None, None]
    dist_scores = jnp.sqrt(jnp.clip((disttotal - distcum) * position_effect, 0.0, None))
    gamma = (-jax.nn.softplus(mod.gammas))[None]                  # (1, H, 1, 1)
    total_effect = jnp.clip(jnp.exp(dist_scores * gamma), 1e-5, 1e5)
    scores = jnp.where(keep, scores * total_effect, -1e32)
    attn = jax.nn.softmax(scores, axis=-1)
    if zero_pad:
        attn = attn.at[:, :, 0, :].set(0.0)
    out = att_mm(attn, v_p)
    concat = out.transpose(0, 2, 1, 3).reshape(B, L, D)
    output = lin(concat, mod.w_o, mod.b_o)
    return output, attn


# ------------------------------------ main -----------------------------------

if __name__ == "__main__":
    B, L, D, H = 2, 8, 32, 4

    key = jax.random.PRNGKey(0)
    kq, kk, kv = jax.random.split(key, 3)
    q = jax.random.normal(kq, (B, L, D), jnp.float32)
    k = jax.random.normal(kk, (B, L, D), jnp.float32)
    v = jax.random.normal(kv, (B, L, D), jnp.float32)
    mask = jnp.tril(jnp.ones((L, L), jnp.float32))    # causal: 1 = attend, 0 = masked

    mod = MultiHeadAttentionWithIndividualFeatures(D, H, key_query_same=True, seed=0)

    output, attn_scores = mod(q, k, v, mask, zero_pad=True)
    jax.block_until_ready((output, attn_scores))
    assert output.shape == (B, L, D) and attn_scores.shape == (B, H, L, L)

    # Tight check vs. a reference that mirrors the kernel's bf16 MXU operands.
    ref_out_b, ref_attn_b = reference_forward(mod, q, k, v, mask, True, mxu_bf16=True)
    assert np.allclose(np.asarray(output), np.asarray(ref_out_b), atol=1e-2, rtol=1e-2)
    assert np.allclose(np.asarray(attn_scores), np.asarray(ref_attn_b), atol=1e-2, rtol=1e-2)

    # Loose sanity check vs. exact-f32 module math (only diff is bf16 MXU operands).
    ref_out, ref_attn = reference_forward(mod, q, k, v, mask, True, mxu_bf16=False)
    assert np.allclose(np.asarray(output), np.asarray(ref_out), atol=5e-2, rtol=5e-2)
    assert np.allclose(np.asarray(attn_scores), np.asarray(ref_attn), atol=5e-2, rtol=5e-2)

    print("KERNEL_OK")
</pallas_src>

<mosaic_0001>
module attributes {stable_mosaic.version = 11 : i64} {
  func.func @_qkv_proj_kernel(%arg0: i32, %arg1: i32, %arg2: i32, %arg3: memref<1x8x32xf32, #tpu.memory_space<vmem>>, %arg4: memref<1x8x32xf32, #tpu.memory_space<vmem>>, %arg5: memref<1x8x32xf32, #tpu.memory_space<vmem>>, %arg6: memref<1x32x8xf32, #tpu.memory_space<vmem>>, %arg7: memref<1x32x8xf32, #tpu.memory_space<vmem>>, %arg8: memref<1x32x8xf32, #tpu.memory_space<vmem>>, %arg9: memref<1x1x8xf32, #tpu.memory_space<vmem>>, %arg10: memref<1x1x8xf32, #tpu.memory_space<vmem>>, %arg11: memref<1x1x8xf32, #tpu.memory_space<vmem>>, %arg12: memref<1x1x8x8xf32, #tpu.memory_space<vmem>>, %arg13: memref<1x1x8x8xf32, #tpu.memory_space<vmem>>, %arg14: memref<1x1x8x8xf32, #tpu.memory_space<vmem>>) attributes {dimension_semantics = [#tpu.dimension_semantics<parallel>, #tpu.dimension_semantics<parallel>, #tpu.dimension_semantics<parallel>], iteration_bounds = array<i64: 2, 1, 4>, scalar_prefetch = 0 : i64, scratch_operands = 0 : i64, tpu.core_type = #tpu.core_type<tc>, window_params = [{transform_indices = @transform_0, window_bounds = array<i64: 1, 8, 32>}, {transform_indices = @transform_1, window_bounds = array<i64: 1, 8, 32>}, {transform_indices = @transform_2, window_bounds = array<i64: 1, 8, 32>}, {transform_indices = @transform_3, window_bounds = array<i64: 1, 32, 8>}, {transform_indices = @transform_4, window_bounds = array<i64: 1, 32, 8>}, {transform_indices = @transform_5, window_bounds = array<i64: 1, 32, 8>}, {transform_indices = @transform_6, window_bounds = array<i64: 1, 1, 8>}, {transform_indices = @transform_7, window_bounds = array<i64: 1, 1, 8>}, {transform_indices = @transform_8, window_bounds = array<i64: 1, 1, 8>}, {transform_indices = @transform_9, window_bounds = array<i64: 1, 1, 8, 8>}, {transform_indices = @transform_10, window_bounds = array<i64: 1, 1, 8, 8>}, {transform_indices = @transform_11, window_bounds = array<i64: 1, 1, 8, 8>}]} {
    %c0 = arith.constant 0 : index
    %c0_0 = arith.constant 0 : index
    %c0_1 = arith.constant 0 : index
    %0 = vector.load %arg3[%c0, %c0_0, %c0_1] : memref<1x8x32xf32, #tpu.memory_space<vmem>>, vector<1x8x32xf32>
    %1 = vector.shape_cast %0 : vector<1x8x32xf32> to vector<8x32xf32>
    %c0_2 = arith.constant 0 : index
    %c0_3 = arith.constant 0 : index
    %c0_4 = arith.constant 0 : index
    %2 = vector.load %arg6[%c0_2, %c0_3, %c0_4] : memref<1x32x8xf32, #tpu.memory_space<vmem>>, vector<1x32x8xf32>
    %3 = vector.shape_cast %2 : vector<1x32x8xf32> to vector<32x8xf32>
    %cst = arith.constant dense<0.000000e+00> : vector<8x8xf32>
    %4 = tpu.matmul %1, %3, %cst {dimension_numbers = #tpu.dot_dimension_numbers<[1], [0], [0], [1], [0, 0, 1, 1], [], []>} : vector<8x32xf32>, vector<32x8xf32>, vector<8x8xf32> -> vector<8x8xf32>
    %c0_5 = arith.constant 0 : index
    %c0_6 = arith.constant 0 : index
    %c0_7 = arith.constant 0 : index
    %5 = vector.load %arg9[%c0_5, %c0_6, %c0_7] : memref<1x1x8xf32, #tpu.memory_space<vmem>>, vector<1x1x8xf32>
    %6 = vector.shape_cast %5 : vector<1x1x8xf32> to vector<1x8xf32>
    %7 = vector.broadcast %6 : vector<1x8xf32> to vector<8x8xf32>
    %8 = arith.addf %4, %7 : vector<8x8xf32>
    %c0_8 = arith.constant 0 : index
    %c0_9 = arith.constant 0 : index
    %c0_10 = arith.constant 0 : index
    %c0_11 = arith.constant 0 : index
    %9 = vector.load %arg12[%c0_8, %c0_9, %c0_10, %c0_11] : memref<1x1x8x8xf32, #tpu.memory_space<vmem>>, vector<1x1x8x8xf32>
    %10 = vector.shape_cast %9 : vector<1x1x8x8xf32> to vector<8x8xf32>
    %11 = vector.shape_cast %8 : vector<8x8xf32> to vector<1x1x8x8xf32>
    tpu.vector_store %arg12[%c0_8, %c0_9, %c0_10, %c0_11], %11 {strides = array<i32>} : memref<1x1x8x8xf32, #tpu.memory_space<vmem>>, vector<1x1x8x8xf32>,
    %c0_12 = arith.constant 0 : index
    %c0_13 = arith.constant 0 : index
    %c0_14 = arith.constant 0 : index
    %12 = vector.load %arg4[%c0_12, %c0_13, %c0_14] : memref<1x8x32xf32, #tpu.memory_space<vmem>>, vector<1x8x32xf32>
    %13 = vector.shape_cast %12 : vector<1x8x32xf32> to vector<8x32xf32>
    %c0_15 = arith.constant 0 : index
    %c0_16 = arith.constant 0 : index
    %c0_17 = arith.constant 0 : index
    %14 = vector.load %arg7[%c0_15, %c0_16, %c0_17] : memref<1x32x8xf32, #tpu.memory_space<vmem>>, vector<1x32x8xf32>
    %15 = vector.shape_cast %14 : vector<1x32x8xf32> to vector<32x8xf32>
    %cst_18 = arith.constant dense<0.000000e+00> : vector<8x8xf32>
    %16 = tpu.matmul %13, %15, %cst_18 {dimension_numbers = #tpu.dot_dimension_numbers<[1], [0], [0], [1], [0, 0, 1, 1], [], []>} : vector<8x32xf32>, vector<32x8xf32>, vector<8x8xf32> -> vector<8x8xf32>
    %c0_19 = arith.constant 0 : index
    %c0_20 = arith.constant 0 : index
    %c0_21 = arith.constant 0 : index
    %17 = vector.load %arg10[%c0_19, %c0_20, %c0_21] : memref<1x1x8xf32, #tpu.memory_space<vmem>>, vector<1x1x8xf32>
    %18 = vector.shape_cast %17 : vector<1x1x8xf32> to vector<1x8xf32>
    %19 = vector.broadcast %18 : vector<1x8xf32> to vector<8x8xf32>
    %20 = arith.addf %16, %19 : vector<8x8xf32>
    %c0_22 = arith.constant 0 : index
    %c0_23 = arith.constant 0 : index
    %c0_24 = arith.constant 0 : index
    %c0_25 = arith.constant 0 : index
    %21 = vector.load %arg13[%c0_22, %c0_23, %c0_24, %c0_25] : memref<1x1x8x8xf32, #tpu.memory_space<vmem>>, vector<1x1x8x8xf32>
    %22 = vector.shape_cast %21 : vector<1x1x8x8xf32> to vector<8x8xf32>
    %23 = vector.shape_cast %20 : vector<8x8xf32> to vector<1x1x8x8xf32>
    tpu.vector_store %arg13[%c0_22, %c0_23, %c0_24, %c0_25], %23 {strides = array<i32>} : memref<1x1x8x8xf32, #tpu.memory_space<vmem>>, vector<1x1x8x8xf32>,
    %c0_26 = arith.constant 0 : index
    %c0_27 = arith.constant 0 : index
    %c0_28 = arith.constant 0 : index
    %24 = vector.load %arg5[%c0_26, %c0_27, %c0_28] : memref<1x8x32xf32, #tpu.memory_space<vmem>>, vector<1x8x32xf32>
    %25 = vector.shape_cast %24 : vector<1x8x32xf32> to vector<8x32xf32>
    %c0_29 = arith.constant 0 : index
    %c0_30 = arith.constant 0 : index
    %c0_31 = arith.constant 0 : index
    %26 = vector.load %arg8[%c0_29, %c0_30, %c0_31] : memref<1x32x8xf32, #tpu.memory_space<vmem>>, vector<1x32x8xf32>
    %27 = vector.shape_cast %26 : vector<1x32x8xf32> to vector<32x8xf32>
    %cst_32 = arith.constant dense<0.000000e+00> : vector<8x8xf32>
    %28 = tpu.matmul %25, %27, %cst_32 {dimension_numbers = #tpu.dot_dimension_numbers<[1], [0], [0], [1], [0, 0, 1, 1], [], []>} : vector<8x32xf32>, vector<32x8xf32>, vector<8x8xf32> -> vector<8x8xf32>
    %c0_33 = arith.constant 0 : index
    %c0_34 = arith.constant 0 : index
    %c0_35 = arith.constant 0 : index
    %29 = vector.load %arg11[%c0_33, %c0_34, %c0_35] : memref<1x1x8xf32, #tpu.memory_space<vmem>>, vector<1x1x8xf32>
    %30 = vector.shape_cast %29 : vector<1x1x8xf32> to vector<1x8xf32>
    %31 = vector.broadcast %30 : vector<1x8xf32> to vector<8x8xf32>
    %32 = arith.addf %28, %31 : vector<8x8xf32>
    %c0_36 = arith.constant 0 : index
    %c0_37 = arith.constant 0 : index
    %c0_38 = arith.constant 0 : index
    %c0_39 = arith.constant 0 : index
    %33 = vector.load %arg14[%c0_36, %c0_37, %c0_38, %c0_39] : memref<1x1x8x8xf32, #tpu.memory_space<vmem>>, vector<1x1x8x8xf32>
    %34 = vector.shape_cast %33 : vector<1x1x8x8xf32> to vector<8x8xf32>
    %35 = vector.shape_cast %32 : vector<8x8xf32> to vector<1x1x8x8xf32>
    tpu.vector_store %arg14[%c0_36, %c0_37, %c0_38, %c0_39], %35 {strides = array<i32>} : memref<1x1x8x8xf32, #tpu.memory_space<vmem>>, vector<1x1x8x8xf32>,
    return
  }
  func.func @transform_0(%arg0: i32, %arg1: i32, %arg2: i32) -> (i32, i32, i32) {
    %c0_i32 = arith.constant 0 : i32
    %c0_i32_0 = arith.constant 0 : i32
    return %arg0, %arg1, %c0_i32 : i32, i32, i32
  }
  func.func @transform_1(%arg0: i32, %arg1: i32, %arg2: i32) -> (i32, i32, i32) {
    %c0_i32 = arith.constant 0 : i32
    %c0_i32_0 = arith.constant 0 : i32
    return %arg0, %arg1, %c0_i32 : i32, i32, i32
  }
  func.func @transform_2(%arg0: i32, %arg1: i32, %arg2: i32) -> (i32, i32, i32) {
    %c0_i32 = arith.constant 0 : i32
    %c0_i32_0 = arith.constant 0 : i32
    return %arg0, %arg1, %c0_i32 : i32, i32, i32
  }
  func.func @transform_3(%arg0: i32, %arg1: i32, %arg2: i32) -> (i32, i32, i32) {
    %c0_i32 = arith.constant 0 : i32
    %c0_i32_0 = arith.constant 0 : i32
    %c0_i32_1 = arith.constant 0 : i32
    return %arg2, %c0_i32, %c0_i32_0 : i32, i32, i32
  }
  func.func @transform_4(%arg0: i32, %arg1: i32, %arg2: i32) -> (i32, i32, i32) {
    %c0_i32 = arith.constant 0 : i32
    %c0_i32_0 = arith.constant 0 : i32
    %c0_i32_1 = arith.constant 0 : i32
    return %arg2, %c0_i32, %c0_i32_0 : i32, i32, i32
  }
  func.func @transform_5(%arg0: i32, %arg1: i32, %arg2: i32) -> (i32, i32, i32) {
    %c0_i32 = arith.constant 0 : i32
    %c0_i32_0 = arith.constant 0 : i32
    %c0_i32_1 = arith.constant 0 : i32
    return %arg2, %c0_i32, %c0_i32_0 : i32, i32, i32
  }
  func.func @transform_6(%arg0: i32, %arg1: i32, %arg2: i32) -> (i32, i32, i32) {
    %c0_i32 = arith.constant 0 : i32
    %c0_i32_0 = arith.constant 0 : i32
    %c0_i32_1 = arith.constant 0 : i32
    return %arg2, %c0_i32, %c0_i32_0 : i32, i32, i32
  }
  func.func @transform_7(%arg0: i32, %arg1: i32, %arg2: i32) -> (i32, i32, i32) {
    %c0_i32 = arith.constant 0 : i32
    %c0_i32_0 = arith.constant 0 : i32
    %c0_i32_1 = arith.constant 0 : i32
    return %arg2, %c0_i32, %c0_i32_0 : i32, i32, i32
  }
  func.func @transform_8(%arg0: i32, %arg1: i32, %arg2: i32) -> (i32, i32, i32) {
    %c0_i32 = arith.constant 0 : i32
    %c0_i32_0 = arith.constant 0 : i32
    %c0_i32_1 = arith.constant 0 : i32
    return %arg2, %c0_i32, %c0_i32_0 : i32, i32, i32
  }
  func.func @transform_9(%arg0: i32, %arg1: i32, %arg2: i32) -> (i32, i32, i32, i32) {
    %c0_i32 = arith.constant 0 : i32
    %c0_i32_0 = arith.constant 0 : i32
    return %arg0, %arg2, %arg1, %c0_i32 : i32, i32, i32, i32
  }
  func.func @transform_10(%arg0: i32, %arg1: i32, %arg2: i32) -> (i32, i32, i32, i32) {
    %c0_i32 = arith.constant 0 : i32
    %c0_i32_0 = arith.constant 0 : i32
    return %arg0, %arg2, %arg1, %c0_i32 : i32, i32, i32, i32
  }
  func.func @transform_11(%arg0: i32, %arg1: i32, %arg2: i32) -> (i32, i32, i32, i32) {
    %c0_i32 = arith.constant 0 : i32
    %c0_i32_0 = arith.constant 0 : i32
    return %arg0, %arg2, %arg1, %c0_i32 : i32, i32, i32, i32
  }
}

</mosaic_0001>

<bundles_post_ra>
// kernel: tpu_custom_call.1
= control target key start
LH: loop header
LB: loop body
LE: loop exit
PB: predicated region body
PF: predicated region fallthrough
CT: control target
= control target key end

     0   :  { %s1581_s0 = inlined_call_operand.vmem [shape: f32[2,8,32], index: 0, kind: input, shape index: {}]   ;;  %s1582_s1 = inlined_call_operand.vmem [shape: f32[2,8,32], index: 1, kind: input, shape index: {}]   ;;  %s1583_s2 = inlined_call_operand.vmem [shape: f32[2,8,32], index: 2, kind: input, shape index: {}]   ;;  %s1584_s3 = inlined_call_operand.vmem [shape: f32[4,32,8], index: 3, kind: input, shape index: {}]   ;;  %s1585_s4 = inlined_call_operand.vmem [shape: f32[4,32,8], index: 4, kind: input, shape index: {}]   ;;  %s1586_s5 = inlined_call_operand.vmem [shape: f32[4,32,8], index: 5, kind: input, shape index: {}]   ;;  %s1587_s6 = inlined_call_operand.vmem [shape: f32[4,1,8], index: 6, kind: input, shape index: {}]   ;;  %s1588_s7 = inlined_call_operand.vmem [shape: f32[4,1,8], index: 7, kind: input, shape index: {}]   ;;  %s1589_s8 = inlined_call_operand.vmem [shape: f32[4,1,8], index: 8, kind: input, shape index: {}]   ;;  %s1590_s9 = inlined_call_operand.hbm [shape: f32[2,4,8,8], index: 9, kind: output, shape index: {0}]   ;;  %s1591_s10 = inlined_call_operand.hbm [shape: f32[2,4,8,8], index: 10, kind: output, shape index: {1}]   ;;  %s1592_s11 = inlined_call_operand.hbm [shape: f32[2,4,8,8], index: 11, kind: output, shape index: {2}]  }
   0x1   :  { %1609 = sst [smem:[#allocation19_spill]] %s1581_s0 }
   0x2   :  { %1610 = sst [smem:[#allocation20_spill]] %s1592_s11 }
   0x3   :  { %17 = vsyncpa [#allocation3], 0 }
   0x4   :  { %19 = vsyncpa [#allocation3 + $0x1], 0 }
   0x5   :  { %20 = vsyncpa [#allocation5], 0 }
   0x6   :  { %22 = vsyncpa [#allocation5 + $0x1], 0  ;;  %s1339_s17 = smov 0   ;;  %s1341_s18 = smov 0  }
   0x7   :  { %s1343_s19 = smov 0   ;;  %s1345_s20 = smov 0  }
   0x8   :  { %s1347_s21 = smov 0   ;;  %s1349_s22 = smov 0  }
   0x9   :  { %s1351_s23 = smov 0   ;;  %s1353_s24 = smov 0  }
   0xa LB: > { %1611 = sst [smem:[#allocation9_spill]] %s1249_s17  ;;  %s1594_s25 = sadd.s32 4294967295, %s1277_s24   ;;  %s1277_s24 = sphi %s1353_s24, %s28_s24   ;;  %s1273_s23 = sphi %s1351_s23, %s1641_s23   ;;  %s1269_s22 = sphi %s1349_s22, %s1640_s22   ;;  %s1265_s21 = sphi %s1347_s21, %s1639_s21   ;;  %s1261_s20 = sphi %s1345_s20, %s1638_s20   ;;  %s1257_s19 = sphi %s1343_s19, %s1637_s19   ;;  %s1253_s18 = sphi %s1341_s18, %s1643_s18   ;;  %s1249_s17 = sphi %s1339_s17, %s1642_s17  }
   0xb   : > { %1612 = sst [smem:[#allocation10_spill]] %s1257_s19  ;;  %s1593_s26 = sadd.s32 4294967294, %s1277_s24  }
   0xc   : > { %1613 = sst [smem:[#allocation11_spill]] %s1269_s22  ;;  %s40_s27 = sadd.s32 1, %s1269_s22 }
   0xd   : > { %1614 = sst [smem:[#allocation12_spill]] %s1273_s23  ;;  %p41_p0 = scmp.ge.s32.totalorder %s40_s27, 4 }
   0xe   : > { %s47_s28 = sadd.s32 1, %s1273_s23  ;;  %p308_p1 = scmp.ne.s32.totalorder %s1257_s19, %s1253_s18 }
   0xf   : > { %p309_p2 = scmp.eq.s32.totalorder %s1594_s25, 7  ;;  %s1645_s27 = smov (%p41_p0, %s40_s27), 0 }
  0x10   : > { %1615 = sst [smem:[#allocation13_spill]] %s1645_s27  ;;  %s1647_s28 = smov (!%p41_p0, %s47_s28), %s1273_s23 }
  0x11   : > { %s292_s29 = ssub.s32 %s1269_s22, %s1645_s27  ;;  %p1392_p3 = por %p309_p2, %p308_p1 }
  0x12   : > { %p49_p4 = scmp.ge.s32.totalorder %s1647_s28, 2  ;;  %p314_p5 = scmp.ne.s32.totalorder %s1253_s18, %s1249_s17 }
  0x13   : > { %s1616_s30 = scalar_select %p1392_p3, 1, 0 }
  0x14   : > { %p315_p6 = scmp.eq.s32.totalorder %s1593_s26, 7  ;;  %p1009_p7 = scmp.ge.s32.totalorder %s1277_s24, 1 }
  0x15   : > { %1617 = sst [smem:[#allocation14_spill]] %s1616_s30  ;;  %s1649_s28 = smov (%p49_p4, %s1647_s28), 0 }
  0x16   : > { %1618 = sst [smem:[#allocation15_spill]] %s1649_s28  ;;  %p1403_p8 = por %p315_p6, %p314_p5 }
  0x17   : > { %p465_p9 = scmp.lt.s32.totalorder %s1277_s24, 9  ;;  %s291_s13 = ssub.s32 %s1273_s23, %s1649_s28 }
  0x18   : > { %s1619_s12 = scalar_select %p1403_p8, 1, 0 }
  0x19   : > { %s298_s14 = sadd.s32 1, %s1257_s19  ;;  %s293_s15 = sor.u32 %s292_s29, %s291_s13 }
  0x1a   : > { %1620 = sst [smem:[#allocation16_spill]] %s1619_s12  ;;  %p466_p10 = pnand %p1009_p7, %p465_p9 }
  0x1b   : > { %p296_p11 = scmp.eq.s32.totalorder %s293_s15, 0 }
  0x1c   : > { %469 = sbr.rel (%p466_p10) target bundleno = 205 (0xcd), region = 56 }
  0x1d   : > { %s1412_s16 = scalar_select %p296_p11, %s1257_s19, %s298_s14  }
  0x1f   : > { %1621 = sst [smem:[#allocation17_spill]] %s1412_s16 }
  0x21   : > { %p576_p12 = scmp.lt.s32.totalorder %s1261_s20, 3  ;;  %p555_p13 = scmp.lt.s32.totalorder %s1265_s21, 1  ;;  %vm609_vm0 = vcmask 261120   ;;  %vm633_vm1 = vcmask 64512  }
  0x22   : > { %s1622_s0 = sld [smem:[#allocation19_spill]]  ;;  %s1143_s29 = scalar_lea.hbm %s1591_s10, 64 }
  0x23   : > { %s1417_s26 = scalar_select %p576_p12, %s1261_s20, 3 }
  0x24   : > { %s556_s25 = scalar_select %p555_p13, %s1265_s21, 1 }
  0x25   : > { %s1036_s27 = sshll.u32 %s1417_s26, 5 }
  0x26   : > { %s590_s15 = scalar_lea.vmem %s1586_s5, %s1036_s27  ;;  %s585_s19 = scalar_lea.vmem %s1585_s4, %s1036_s27 }
  0x27   : > { %v672_v0 = vld [vmem:[%s590_s15 + $0x18] sm:$0xff]  ;;  %v671_v1 = vld [vmem:[%s590_s15 + $0x10] sm:$0xff]  ;;  %s580_s30 = scalar_lea.vmem %s1584_s3, %s1036_s27  ;;  %s1013_s11 = sshll.u32 %s556_s25, 3  ;;  %v670_v4 = vld [vmem:[%s590_s15 + $0x8] sm:$0xff] }
  0x28   : > { %692 = vmatpush.msra.mxu2 %v672_v0  ;;  %v639_v2 = vld [vmem:[%s585_s19 + $0x18] sm:$0xff]  ;;  %v638_v5 = vld [vmem:[%s585_s19 + $0x10] sm:$0xff]  ;;  %s575_s13 = scalar_lea.vmem %s1583_s2, %s1013_s11  ;;  %v637_v7 = vld [vmem:[%s585_s19 + $0x8] sm:$0xff]  ;;  %s568_s17 = scalar_lea.vmem %s1582_s1, %s1013_s11 }
  0x29   : > { %v604_v3 = vld [vmem:[%s580_s30 + $0x18] sm:$0xff]  ;;  %659 = vmatpush.msra.mxu1 %v639_v2  ;;  %v603_v6 = vld [vmem:[%s580_s30 + $0x10] sm:$0xff]  ;;  %v602_v8 = vld [vmem:[%s580_s30 + $0x8] sm:$0xff]  ;;  %s561_s12 = scalar_lea.vmem %s1622_s0, %s1013_s11  ;;  %s593_s11 = scalar_lea.vmem %s1587_s6, %s1417_s26 }
  0x2a   : > { %625 = vmatpush.msra.mxu0 %v604_v3  ;;  %693 = vmatpush.msra.mxu2 %v671_v1  ;;  %v669_v9 = vld [vmem:[%s590_s15] sm:$0xff]  ;;  %s1623_s25 = sadd.s32 4294967295, %s1277_s24  }
  0x2b   : > { %660 = vmatpush.msra.mxu1 %v638_v5  ;;  %v668_v10 = vld [vmem:[%s575_s13] sm:$0xff]  ;;  %s1028_s13 = sshll.u32 %s1265_s21, 2  ;;  %s1460_s27 = sand.u32 1, %s1623_s25  }
  0x2c   : > { %626 = vmatpush.msra.mxu0 %v603_v6  ;;  %694 = vmatpush.msra.mxu2 %v670_v4  ;;  %v636_v11 = vld [vmem:[%s585_s19] sm:$0xff]  ;;  %s599_s19 = scalar_lea.vmem %s1589_s8, %s1417_s26  ;;  %s723_s22 = sadd.s32 %s1261_s20, %s1028_s13 }
  0x2d   : > { %661 = vmatpush.msra.mxu1 %v637_v7  ;;  %v601_v12 = vld [vmem:[%s580_s30] sm:$0xff]  ;;  %s1605_s30 = sand.u32 1, %s1253_s18   ;;  %s1624_s13 = scalar_lea.vmem %s1588_s7, %s1417_s26 }
  0x2e   : > { %627 = vmatpush.msra.mxu0 %v602_v8  ;;  %v635_v13 = vld [vmem:[%s568_s17] sm:$0xff]  ;;  %695 = vmatpush.msra.mxu2 %v669_v9  ;;  %s1456_s16 = sshll.u32 %s1605_s30, 3  ;;  %s1029_s17 = sshll.u32 %s723_s22, 3 }
  0x2f   : > { %v600_v14 = vld [vmem:[%s561_s12] sm:$0xff]  ;;  %1024 = vmatmul.msk.f32.vlgmr.msra.gmra.mxu2 %vm609_vm0, %v668_v10  ;;  %662 = vmatpush.msra.mxu1 %v636_v11  ;;  %s742_s15 = scalar_lea.hbm %s1591_s10, %s1029_s17  ;;  %s725_s21 = scalar_lea.hbm %s1590_s9, %s1029_s17 }
  0x30   : > { %628 = vmatpush.msra.mxu0 %v601_v12  ;;  %1023 = vmatmul.msk.f32.vlgmr.msra.gmra.mxu1 %vm609_vm0, %v635_v13  ;;  %v1120_v15 = vld [vmem:[%s1624_s13] ss:$0 sm:$0xff]  ;;  %s547_s30 = scalar_lea.vmem [#allocation4], %s1456_s16  ;;  %s1476_s22 = sshll.u32 %s742_s15, 4  ;;  %s747_s22 = int_to_ptr.hbm [resolvable:$true] %s1476_s22 }
  0x31   : > { %1022 = vmatmul.msk.f32.vlgmr.msra.gmra.mxu0 %vm609_vm0, %v600_v14  ;;  %s1474_s0 = sshll.u32 %s547_s30, 4  ;;  %v1121_v16 = vld [vmem:[%s593_s11] ss:$0 sm:$0xff]  ;;  %s1606_s25 = scalar_lea.vmem [#allocation2], %s1456_s16  ;;  %s745_s0 = int_to_ptr.vmem [resolvable:$true] %s1474_s0 }
  0x32   : > { %s1481_s12 = sshll.u32 %s1606_s25, 4  ;;  %s1483_s14 = sshll.u32 %s725_s21, 4  ;;  %v1122_v21 = vld [vmem:[%s599_s19] ss:$0 sm:$0xff]  ;;  %s730_s14 = int_to_ptr.hbm [resolvable:$true] %s1483_s14 }
  0x33   : > { %1625 = sst [smem:[#allocation18_spill]] %s1481_s12  ;;  %s1608_s28 = scalar_lea.vmem [#allocation6], %s1456_s16 }
  0x34   : > { %s1626_s11 = sld [smem:[#allocation20_spill]]  ;;  %s1496_s21 = sshll.u32 %s1608_s28, 4  ;;  %s762_s21 = int_to_ptr.vmem [resolvable:$true] %s1496_s21 }
  0x35   : > { %s707_s13 = scalar_lea.sflag [#allocation5], %s1460_s27  ;;  %s1137_s25 = sshra.s32 %s747_s22, 4  ;;  %s1138_s25 = int_to_ptr.hbm [resolvable:$true] %s1137_s25 }
  0x36   : > { %p1144_p4 = scmp.lt.s32.totalorder %s1138_s25, %s1591_s10 }
  0x3a   : > { %s759_s15 = scalar_lea.hbm %s1626_s11, %s1029_s17  ;;  %s1139_s17 = scalar_lea.hbm %s1138_s25, 8 }
  0x3b   : > { %s1498_s20 = sshll.u32 %s759_s15, 4  ;;  %p1140_p0 = scmp.ne.s32.totalorder %s1138_s25, %s1139_s17  ;;  %s764_s20 = int_to_ptr.hbm [resolvable:$true] %s1498_s20 }
  0x3c   : > { %p1145_p5 = scmp.lt.s32.totalorder %s1143_s29, %s1139_s17 }
  0x3d   : > { %p1141_p1 = pnand %p1140_p0, %p1392_p3 }
  0x3e   : > { %p1146_p6 = por %p1145_p5, %p1144_p4 }
  0x3f   : > { %p1142_p2 = pneg %p1141_p1 }
  0x41   : > { %p1147_p7 = pnand %p1146_p6, %p1142_p2 }
  0xad   : > { %v664_v17 = vpop.f32.mrf.mxu1 }
  0xae   : > { %v665_v18 = vadd.f32 %v1120_v15, %v664_v17  ;;  %v630_v19 = vpop.f32.mrf.mxu0 }
  0xaf   : > { %v631_v20 = vadd.f32 %v1121_v16, %v630_v19 }
  0xb0   : > { %667 = vst.msk [vmem:[%s547_s30] sm:$0xff] %vm633_vm1, %v665_v18 }
  0xb1   : > { %1150 = shalt.err (!%p1147_p7)
}
  0xb2   : > { %1040 = dma.vmem_to_hbm [thread:$0]  (%p1392_p3), %s745_s0, 128, %s747_s22, %s707_s13   ;;  %v697_v22 = vpop.f32.mrf.mxu2 }
  0xb3   : > { %s1628_s15 = scalar_lea.vmem [#allocation2], %s1456_s16  ;;  %s1629_s26 = sand.u32 1, %s1253_s18  }
  0xb4   : > { %634 = vst.msk [vmem:[%s1628_s15] sm:$0xff] %vm633_vm1, %v631_v20  ;;  %s702_s12 = scalar_lea.sflag [#allocation3], %s1629_s26  ;;  %s1165_s25 = sshra.s32 %s730_s14, 4  ;;  %s1166_s25 = int_to_ptr.hbm [resolvable:$true] %s1165_s25 }
  0xb5   : > { %s1167_s17 = scalar_lea.hbm %s1166_s25, 8  ;;  %s1171_s30 = scalar_lea.hbm %s1590_s9, 64 }
  0xb6   : > { %p1168_p9 = scmp.ne.s32.totalorder %s1166_s25, %s1167_s17  ;;  %p1172_p12 = scmp.lt.s32.totalorder %s1166_s25, %s1590_s9 }
  0xb7   : > { %p1173_p13 = scmp.lt.s32.totalorder %s1171_s30, %s1167_s17 }
  0xb8   : > { %p1169_p10 = pnand %p1168_p9, %p1392_p3 }
  0xb9   : > { %p1174_p0 = por %p1173_p13, %p1172_p12 }
  0xba   : > { %p1170_p11 = pneg %p1169_p10 }
  0xbc   : > { %p1175_p1 = pnand %p1174_p0, %p1170_p11 }
  0xbe   : > { %1178 = shalt.err (!%p1175_p1)
}
  0xbf   : > { %s1630_s22 = sld [smem:[#allocation18_spill]]  ;;  %v698_v23 = vadd.f32 %v1122_v21, %v697_v22  ;;  %s1632_s28 = scalar_lea.vmem [#allocation6], %s1456_s16 }
  0xc0   : > { %s1193_s26 = sshra.s32 %s764_s20, 4  ;;  %s1199_s29 = scalar_lea.hbm %s1626_s11, 64  ;;  %s1194_s26 = int_to_ptr.hbm [resolvable:$true] %s1193_s26 }
  0xc1   : > { %700 = vst.msk [vmem:[%s1632_s28] sm:$0xff] %vm633_vm1, %v698_v23  ;;  %s1195_s25 = scalar_lea.hbm %s1194_s26, 8  ;;  %p1200_p6 = scmp.lt.s32.totalorder %s1194_s26, %s1626_s11 }
  0xc2   : > { %p1196_p2 = scmp.ne.s32.totalorder %s1194_s26, %s1195_s25  ;;  %p1201_p7 = scmp.lt.s32.totalorder %s1199_s29, %s1195_s25 }
  0xc4   : > { %p1197_p4 = pnand %p1196_p2, %p1392_p3  ;;  %p1202_p9 = por %p1201_p7, %p1200_p6 }
  0xc5   : > { %s1631_s15 = int_to_ptr.vmem [resolvable:$true] %s1630_s22 }
  0xc6   : > { %1039 = dma.vmem_to_hbm [thread:$0]  (%p1392_p3), %s1631_s15, 128, %s730_s14, %s702_s12  }
  0xc7   : > { %p1198_p5 = pneg %p1197_p4 }
  0xc9   : > { %p1203_p10 = pnand %p1202_p9, %p1198_p5 }
  0xcb   : > { %1206 = shalt.err (!%p1203_p10)
}
  0xcc   : > { %1041 = dma.vmem_to_hbm [thread:$0]  (%p1392_p3), %s762_s21, 128, %s764_s20, %s707_s13  }
  0xcd PF: > { %s1633_s16 = sld [smem:[#allocation9_spill]]  ;;  %p1055_p11 = scmp.ge.s32.totalorder %s1277_s24, 2 }
  0xcf   : > { %p1046_p12 = pnand %p1055_p11, %p1403_p8 }
  0xd1   : > { %p1047_p13 = pneg %p1046_p12 }
  0xd3   : > { %s775_s12 = sand.u32 1, %s1633_s16  }
  0xd4   : > { %s776_s22 = scalar_lea.sflag [#allocation3], %s775_s12 }
  0xd5   : > { %1240 = dma.done.wait (%p1047_p13), %s776_s22, 128  }
  0xd6   : > { %1242 = vsyncadd (%p1047_p13), %s776_s22, 4294967168  ;;  %s1635_s15 = sadd.s32 4294967294, %s1277_s24  }
  0xd7   : > { %s785_s28 = sand.u32 1, %s1635_s15  }
  0xd8   : > { %s786_s26 = scalar_lea.sflag [#allocation5], %s785_s28 }
  0xd9   : > { %1244 = dma.done.wait (%p1047_p13), %s786_s26, 256  }
  0xda   : > { %1246 = vsyncadd (%p1047_p13), %s786_s26, 4294967040  ;;  %s28_s24 = sadd.s32 1, %s1277_s24   ;;  %s1636_s27 = sld [smem:[#allocation10_spill]] }
  0xdb   : > { %p25_p3 = scmp.ge.s32.totalorder %s28_s24, 10   ;;  %s1637_s19 = sld [smem:[#allocation17_spill]] }
  0xdc   : > { %s1638_s20 = sld [smem:[#allocation11_spill]]  ;;  %s1642_s17 = smov %s1253_s18 }
  0xdd   : > { %s1639_s21 = sld [smem:[#allocation12_spill]]  ;;  %27 = sbr.rel (!%p25_p3) target bundleno = 10 (0xa), region = 147 }
  0xde   : > { %s1640_s22 = sld [smem:[#allocation13_spill]] }
  0xdf   : > { %s1641_s23 = sld [smem:[#allocation15_spill]] }
  0xe0   : > { %s1643_s18 = smov %s1636_s27 }
  0xe2   :  { %802 = vsyncpa [#allocation3], 1 }
  0xe3   :  { %804 = vsyncpa [#allocation3 + $0x1], 1 }
  0xe4   :  { %805 = vsyncpa [#allocation5], 1 }
  0xe5   :  { %807 = vsyncpa [#allocation5 + $0x1], 1 }

</bundles_post_ra>
